<compile_context>
chip_gen: v6e
topology: v6e:2x2x1
jax: 0.10.0
libtpu: 0.0.40
codegen_flags: <defaults>
</compile_context>

<pallas_src>
import jax
import jax.numpy as jnp
from jax.experimental import pallas as pl
from jax.experimental.pallas import tpu as pltpu

# ----------------------------- model dims ----------------------------------
B = 2                   # batch
C_IN = 3                # image channels (RGB, as EfficientNet expects)
H = W = 16              # small spatial size
C_STEM = 32             # stand-in for EfficientNet's `num_features` (1408 in b2)
CNN_OUT = 600           # cnn_out_features
META_HID = 400          # metadata hidden
META_OUT = 150          # metadata_out_features
N_FEATURES = 8          # n_features (metadata input dim)

K_TAPS = 3 * 3 * C_IN   # 27 im2col columns
K_PAD = 32              # contraction dim padded (col 27 = ones -> conv bias)

META_IN_AUG = N_FEATURES + 1   # 9   : metadata + constant-1 column (carries b1)
HID_AUG = 408                  # 400 hidden + 1 constant-1 unit + 7 zero pad
CONST_H = META_HID             # 400 : index of the constant-1 unit in h1
META_OUT_AUG = 152             # 150 + 1 constant-1 unit + 1 zero pad
CONST_O = META_OUT             # 150 : index of the constant-1 unit in h2
W_HEAD_LEN = 384               # packed head row: [0:32]=w_img, [128:280]=w3_meta

_vmem = pl.BlockSpec(memory_space=pltpu.MemorySpace.VMEM)


# ----------------------- fused forward kernel -------------------------------
def fused_forward_kernel(patches_ref, wc_ref, meta_ref, w1_ref, w2_ref,
                         w_head_ref, out_ref):
    """patches_ref: (B*H*W, K_PAD) bf16 im2col patches; col 27 = 1 (bias unit)
       wc_ref:      (K_PAD, C_STEM) bf16; rows 0..26 = conv taps, row 27 = bc
       meta_ref:    (B, META_IN_AUG) f32; col 8 = 1 (bias unit)
       w1_ref:      (META_IN_AUG, HID_AUG) f32; row 8 = b1, col 400 = const unit
       w2_ref:      (HID_AUG, META_OUT_AUG) bf16; row 400 = b2 + const carry
       w_head_ref:  (1, W_HEAD_LEN) f32; [0:32]=(wf@w3[:600])/(H*W),
                    [128:278]=w3[600:], [278]=bf@w3[:600]+b3
       out_ref:     (B, 1) f32
    """
    # ---- CNN branch: conv3x3 'same' as one bf16 im2col matmul (bias folded
    # ---- into the ones column), ReLU, spatial SUM (GAP scale folded in head).
    conv_act = jnp.maximum(
        jnp.dot(patches_ref[...], wc_ref[...],
                preferred_element_type=jnp.float32), 0.0)        # (B*H*W, C_STEM)
    gap_sum = jnp.sum(conv_act.reshape(B, H * W, C_STEM), axis=1)  # (B, C_STEM)

    # ---- metadata MLP (all biases folded into augmented weights) ----
    h1 = jnp.maximum(
        jnp.dot(meta_ref[...], w1_ref[...],
                preferred_element_type=jnp.float32), 0.0)        # (B, HID_AUG)
    h2 = jnp.maximum(
        jnp.dot(h1.astype(jnp.bfloat16), w2_ref[...],
                preferred_element_type=jnp.float32), 0.0)        # (B, META_OUT_AUG)

    # ---- final head: `_fc` + Linear(750->1) folded to two short rows;
    # ---- contractions done as elementwise-mul + lane reduce.
    w_img = w_head_ref[:, 0:C_STEM]                              # (1, 32)
    w3m = w_head_ref[:, 128:128 + META_OUT_AUG]                  # (1, 152)
    out_ref[...] = (jnp.sum(gap_sum * w_img, axis=-1, keepdims=True)
                    + jnp.sum(h2 * w3m, axis=-1, keepdims=True))


# ------------------------------ wrapper --------------------------------------
def _im2col_aug(images_nchw):
    """NCHW image -> (B*H*W, K_PAD) bf16 'same'-padded 3x3 patch matrix.
    Column 27 is a ones column (carries the conv bias), 28..31 are zero."""
    x = jnp.transpose(images_nchw, (0, 2, 3, 1))                  # NCHW -> NHWC
    xp = jnp.pad(x, ((0, 0), (1, 1), (1, 1), (0, 0)))             # 'same' pad
    taps = [xp[:, ky:ky + H, kx:kx + W, :]
            for ky in range(3) for kx in range(3)]                # (ky, kx, c)
    patches = jnp.concatenate(taps, axis=-1).reshape(B * H * W, K_TAPS)
    ones = jnp.ones((B * H * W, 1), jnp.float32)
    pad0 = jnp.zeros((B * H * W, K_PAD - K_TAPS - 1), jnp.float32)
    return jnp.concatenate([patches, ones, pad0], axis=-1).astype(jnp.bfloat16)


@jax.jit
def melanoma_forward(images, metadata, params):
    patches = _im2col_aug(images)                                       # (512, 32)
    meta_aug = jnp.concatenate(
        [metadata, jnp.ones((B, 1), metadata.dtype)], axis=1)           # (B, 9)
    # NOTE(v7x scaling): for large B, switch to a grid over blocks of B*H*W rows
    # (multiple of 8) with dimension_semantics=("parallel",); halve the block
    # batch on v7x (64 MiB VMEM, 2 TensorCores) relative to v5e/v6e.
    return pl.pallas_call(
        fused_forward_kernel,
        out_shape=jax.ShapeDtypeStruct((B, 1), jnp.float32),
        in_specs=[_vmem] * 6,
        out_specs=_vmem,
    )(patches, params["wc_aug"], meta_aug, params["w1_aug"],
      params["w2_aug"], params["w_head"])


# --------------------------- param initialization ---------------------------
def init_params(key):
    """Raw (PyTorch-layout-equivalent) f32 parameters."""
    ks = jax.random.split(key, 10)

    def u(k, shape, fan_in):
        bound = 1.0 / jnp.sqrt(jnp.float32(fan_in))
        return jax.random.uniform(k, shape, jnp.float32, -bound, bound)

    return {
        "wc": u(ks[0], (3, 3, C_IN, C_STEM), 3 * 3 * C_IN),
        "bc": u(ks[1], (1, C_STEM), 3 * 3 * C_IN),
        "wf": u(ks[2], (C_STEM, CNN_OUT), C_STEM),
        "bf": u(ks[3], (1, CNN_OUT), C_STEM),
        "w1": u(ks[4], (N_FEATURES, META_HID), N_FEATURES),
        "b1": u(ks[5], (1, META_HID), N_FEATURES),
        "w2": u(ks[6], (META_HID, META_OUT), META_HID),
        "b2": u(ks[7], (1, META_OUT), META_HID),
        "w3": u(ks[8], (CNN_OUT + META_OUT, 1), CNN_OUT + META_OUT),
        "b3": u(ks[9], (1, 1), CNN_OUT + META_OUT),
    }


def prepare_params(raw):
    """One-time (off the per-call path) packing / folding of kernel params."""
    f32 = jnp.float32
    # conv: flatten (3,3,C_IN,C_STEM) -> (27,C_STEM) in (ky,kx,c) order, append
    # the bias as row 27 (matched by the ones column of the patch matrix).
    wc_aug = jnp.zeros((K_PAD, C_STEM), f32)
    wc_aug = wc_aug.at[:K_TAPS].set(raw["wc"].reshape(K_TAPS, C_STEM))
    wc_aug = wc_aug.at[K_TAPS].set(raw["bc"][0])
    # metadata layer 1: b1 folded into row 8; col 400 is a constant-1 unit.
    w1_aug = jnp.zeros((META_IN_AUG, HID_AUG), f32)
    w1_aug = w1_aug.at[:N_FEATURES, :META_HID].set(raw["w1"])
    w1_aug = w1_aug.at[N_FEATURES, :META_HID].set(raw["b1"][0])
    w1_aug = w1_aug.at[N_FEATURES, CONST_H].set(1.0)
    # metadata layer 2: b2 folded into row 400, which also forwards the
    # constant-1 unit to column 150.
    w2_aug = jnp.zeros((HID_AUG, META_OUT_AUG), f32)
    w2_aug = w2_aug.at[:META_HID, :META_OUT].set(raw["w2"])
    w2_aug = w2_aug.at[CONST_H, :META_OUT].set(raw["b2"][0])
    w2_aug = w2_aug.at[CONST_H, CONST_O].set(1.0)
    # head: fold the activation-free `_fc` (32->600) into Linear(750->1) (exact,
    # in f32), plus the 1/(H*W) GAP scale and all remaining biases.
    w3_img = raw["w3"][:CNN_OUT]                    # (600, 1)
    w3_meta = raw["w3"][CNN_OUT:]                   # (150, 1)
    w_img = (raw["wf"] @ w3_img) / float(H * W)     # (32, 1)
    b_fused = raw["bf"] @ w3_img + raw["b3"]        # (1, 1)
    w_head = jnp.zeros((1, W_HEAD_LEN), f32)
    w_head = w_head.at[0, :C_STEM].set(w_img[:, 0])
    w_head = w_head.at[0, 128:128 + META_OUT].set(w3_meta[:, 0])
    w_head = w_head.at[0, 128 + CONST_O].set(b_fused[0, 0])
    return {
        "wc_aug": wc_aug.astype(jnp.bfloat16),
        "w1_aug": w1_aug,
        "w2_aug": w2_aug.astype(jnp.bfloat16),
        "w_head": w_head,
    }


# --------------------------- pure-JAX reference ------------------------------
def reference_forward(images, metadata, p):
    x = jnp.transpose(images, (0, 2, 3, 1))
    xp = jnp.pad(x, ((0, 0), (1, 1), (1, 1), (0, 0)))
    acc = jnp.zeros((B, H, W, C_STEM), jnp.float32)
    for ky in range(3):
        for kx in range(3):
            acc = acc + jnp.einsum("bhwc,co->bhwo",
                                   xp[:, ky:ky + H, kx:kx + W, :],
                                   p["wc"][ky, kx])
    act = jnp.maximum(acc + p["bc"][0], 0.0)
    gap = jnp.mean(act, axis=(1, 2))
    img_out = gap @ p["wf"] + p["bf"]
    h1 = jnp.maximum(metadata @ p["w1"] + p["b1"], 0.0)
    h2 = jnp.maximum(h1 @ p["w2"] + p["b2"], 0.0)
    cat = jnp.concatenate([img_out, h2], axis=1)
    return cat @ p["w3"] + p["b3"]


# --------------------------------- main --------------------------------------
if __name__ == "__main__":
    key = jax.random.PRNGKey(0)
    k_img, k_meta, k_param = jax.random.split(key, 3)

    images = jax.random.normal(k_img, (B, C_IN, H, W), jnp.float32)    # NCHW
    metadata = jax.random.normal(k_meta, (B, N_FEATURES), jnp.float32)
    raw_params = init_params(k_param)
    params = prepare_params(raw_params)     # one-time fold/pack, not per-call

    out = melanoma_forward(images, metadata, params)
    out = jax.block_until_ready(out)

    ref = reference_forward(images, metadata, raw_params)
    assert out.shape == (B, 1)
    assert jnp.allclose(out, ref, atol=2e-2, rtol=2e-2)

    print("KERNEL_OK")
</pallas_src>

<mosaic_0001>
module attributes {stable_mosaic.version = 11 : i64} {
  func.func @fused_forward_kernel(%arg0: memref<512x32xbf16, #tpu.memory_space<vmem>>, %arg1: memref<32x32xbf16, #tpu.memory_space<vmem>>, %arg2: memref<2x9xf32, #tpu.memory_space<vmem>>, %arg3: memref<9x408xf32, #tpu.memory_space<vmem>>, %arg4: memref<408x152xbf16, #tpu.memory_space<vmem>>, %arg5: memref<1x384xf32, #tpu.memory_space<vmem>>, %arg6: memref<2x1xf32, #tpu.memory_space<vmem>>) attributes {dimension_semantics = [], scalar_prefetch = 0 : i64, scratch_operands = 0 : i64, tpu.core_type = #tpu.core_type<tc>} {
    %c0 = arith.constant 0 : index
    %c0_0 = arith.constant 0 : index
    %0 = vector.load %arg0[%c0, %c0_0] : memref<512x32xbf16, #tpu.memory_space<vmem>>, vector<512x32xbf16>
    %c0_1 = arith.constant 0 : index
    %c0_2 = arith.constant 0 : index
    %1 = vector.load %arg1[%c0_1, %c0_2] : memref<32x32xbf16, #tpu.memory_space<vmem>>, vector<32x32xbf16>
    %cst = arith.constant dense<0.000000e+00> : vector<512x32xf32>
    %2 = tpu.matmul %0, %1, %cst {dimension_numbers = #tpu.dot_dimension_numbers<[1], [0], [0], [1], [0, 0, 1, 1], [], []>} : vector<512x32xbf16>, vector<32x32xbf16>, vector<512x32xf32> -> vector<512x32xf32>
    %cst_3 = arith.constant 0.000000e+00 : f32
    %3 = vector.broadcast %cst_3 : f32 to vector<512x32xf32>
    %4 = arith.maximumf %2, %3 : vector<512x32xf32>
    %5 = vector.shape_cast %4 : vector<512x32xf32> to vector<2x256x32xf32>
    %cst_4 = arith.constant dense<0.000000e+00> : vector<2x32xf32>
    %6 = vector.multi_reduction <add>, %5, %cst_4 [1] : vector<2x256x32xf32> to vector<2x32xf32>
    %c0_5 = arith.constant 0 : index
    %c0_6 = arith.constant 0 : index
    %7 = vector.load %arg2[%c0_5, %c0_6] : memref<2x9xf32, #tpu.memory_space<vmem>>, vector<2x9xf32>
    %c0_7 = arith.constant 0 : index
    %c0_8 = arith.constant 0 : index
    %8 = vector.load %arg3[%c0_7, %c0_8] : memref<9x408xf32, #tpu.memory_space<vmem>>, vector<9x408xf32>
    %cst_9 = arith.constant dense<0.000000e+00> : vector<2x408xf32>
    %9 = tpu.matmul %7, %8, %cst_9 {dimension_numbers = #tpu.dot_dimension_numbers<[1], [0], [0], [1], [0, 0, 1, 1], [], []>} : vector<2x9xf32>, vector<9x408xf32>, vector<2x408xf32> -> vector<2x408xf32>
    %cst_10 = arith.constant 0.000000e+00 : f32
    %10 = vector.broadcast %cst_10 : f32 to vector<2x408xf32>
    %11 = arith.maximumf %9, %10 : vector<2x408xf32>
    %12 = arith.truncf %11 : vector<2x408xf32> to vector<2x408xbf16>
    %c0_11 = arith.constant 0 : index
    %c0_12 = arith.constant 0 : index
    %13 = vector.load %arg4[%c0_11, %c0_12] : memref<408x152xbf16, #tpu.memory_space<vmem>>, vector<408x152xbf16>
    %cst_13 = arith.constant dense<0.000000e+00> : vector<2x152xf32>
    %14 = tpu.matmul %12, %13, %cst_13 {dimension_numbers = #tpu.dot_dimension_numbers<[1], [0], [0], [1], [0, 0, 1, 1], [], []>} : vector<2x408xbf16>, vector<408x152xbf16>, vector<2x152xf32> -> vector<2x152xf32>
    %cst_14 = arith.constant 0.000000e+00 : f32
    %15 = vector.broadcast %cst_14 : f32 to vector<2x152xf32>
    %16 = arith.maximumf %14, %15 : vector<2x152xf32>
    %c0_15 = arith.constant 0 : index
    %c0_16 = arith.constant 0 : index
    %17 = vector.load %arg5[%c0_15, %c0_16] : memref<1x384xf32, #tpu.memory_space<vmem>>, vector<1x32xf32>
    %c0_17 = arith.constant 0 : index
    %c128 = arith.constant 128 : index
    %18 = vector.load %arg5[%c0_17, %c128] : memref<1x384xf32, #tpu.memory_space<vmem>>, vector<1x152xf32>
    %19 = vector.broadcast %17 : vector<1x32xf32> to vector<2x32xf32>
    %20 = arith.mulf %6, %19 : vector<2x32xf32>
    %cst_18 = arith.constant dense<0.000000e+00> : vector<2xf32>
    %21 = vector.multi_reduction <add>, %20, %cst_18 [1] : vector<2x32xf32> to vector<2xf32>
    %22 = vector.shape_cast %21 : vector<2xf32> to vector<2x1xf32>
    %23 = vector.broadcast %18 : vector<1x152xf32> to vector<2x152xf32>
    %24 = arith.mulf %16, %23 : vector<2x152xf32>
    %cst_19 = arith.constant dense<0.000000e+00> : vector<2xf32>
    %25 = vector.multi_reduction <add>, %24, %cst_19 [1] : vector<2x152xf32> to vector<2xf32>
    %26 = vector.shape_cast %25 : vector<2xf32> to vector<2x1xf32>
    %27 = arith.addf %22, %26 : vector<2x1xf32>
    %c0_20 = arith.constant 0 : index
    %c0_21 = arith.constant 0 : index
    %28 = vector.load %arg6[%c0_20, %c0_21] : memref<2x1xf32, #tpu.memory_space<vmem>>, vector<2x1xf32>
    tpu.vector_store %arg6[%c0_20, %c0_21], %27 {strides = array<i32>} : memref<2x1xf32, #tpu.memory_space<vmem>>, vector<2x1xf32>,
    return
  }
}

</mosaic_0001>

<bundles_post_ra>
// kernel: melanoma_forward.1
= control target key start
LH: loop header
LB: loop body
LE: loop exit
PB: predicated region body
PF: predicated region fallthrough
CT: control target
= control target key end

     0   :  { %vm865_vm0 = vcmask 1040384   ;;  %v1817_v3 = vmov 0.0   ;;  %vm861_vm1 = vcmask 72704   ;;  %vm264_vm2 = vcmask 261120   ;;  %s2253_s3 = inlined_call_operand.vmem [shape: f32[9,408], index: 3, kind: input, shape index: {}]   ;;  %s2254_s2 = inlined_call_operand.vmem [shape: f32[2,9], index: 2, kind: input, shape index: {}]   ;;  %s2255_s1 = inlined_call_operand.vmem [shape: bf16[32,32], index: 1, kind: input, shape index: {}]   ;;  %s2256_s0 = inlined_call_operand.vmem [shape: bf16[512,32], index: 0, kind: input, shape index: {}]   ;;  %s2257_s4 = inlined_call_operand.vmem [shape: bf16[408,152], index: 4, kind: input, shape index: {}]   ;;  %s2258_s5 = inlined_call_operand.vmem [shape: f32[1,384], index: 5, kind: input, shape index: {}]   ;;  %s2259_s6 = inlined_call_operand.vmem [shape: f32[2,1], index: 6, kind: output, shape index: {}]  }
   0x1   :  { %v858_v0 = vld [vmem:[%s2253_s3 + $0x28] sm:$0x1]  ;;  %v857_v1 = vld [vmem:[%s2253_s3 + $0x20] sm:$0x1]  ;;  %942 = vmatprep.mubr.f32.mxu1 %v1817_v3  ;;  %v1710_v10 = vld [vmem:[%s2256_s0 + $0x10] sm:$0xff]   ;;  %vm1334_vm3 = vcmask 195584  }
   0x2   :  { %v854_v2 = vld [vmem:[%s2253_s3 + $0x8] sm:$0xff]  ;;  %1542 = vmatprep.subr.msk.mxu1 %vm865_vm0, %v858_v0  ;;  %v853_v4 = vld [vmem:[%s2253_s3] sm:$0xff]  ;;  %v860_v11 = vld [vmem:[%s2253_s3 + $0x38] sm:$0x1]  ;;  %vm1338_vm4 = vcmask 1043456   ;;  %vm1442_vm5 = vcmask 1041409  }
   0x3   :  { %v852_v5 = vld [vmem:[%s2254_s2] sm:$0x3]  ;;  %1543 = vmatpush1.msk.msra.mxu1 %vm865_vm0, %v857_v1  ;;  %v1706_v6 = vld [vmem:[%s2255_s1 + $0x8] sm:$0xff]   ;;  %v859_v12 = vld [vmem:[%s2253_s3 + $0x30] sm:$0x1]  ;;  %vm1445_vm6 = vcmask 254976  }
   0x4   :  { %908 = vmatprep.subr.mxu1 %v854_v2  ;;  %v1707_v7 = vld [vmem:[%s2255_s1] sm:$0xff]   ;;  %1637 = vmatprep.subr.bf16.mxu0 %v1706_v6  ;;  %v1709_v9 = vld [vmem:[%s2256_s0 + $0x8] sm:$0xff]   ;;  %v856_v13 = vld [vmem:[%s2253_s3 + $0x18] sm:$0xff]  ;;  %vm1462_vm7 = vcmask 1041408   ;;  %vm1464_vm8 = vcmask 189440   ;;  %vm1470_vm9 = vcmask 1024  }
   0x5   :  { %909 = vmatpush1.msra.mxu1 %v853_v4  ;;  %v1708_v8 = vld [vmem:[%s2256_s0] sm:$0xff]   ;;  %1638 = vmatpush3.bf16.msra.mxu0 %v1706_v6  ;;  %v855_v14 = vld [vmem:[%s2253_s3 + $0x10] sm:$0xff]  ;;  %v1711_v15 = vld [vmem:[%s2256_s0 + $0x18] sm:$0xff]  }
   0x6   :  { %1544 = vmatmul.mubr.msk.f32.vlgmr.msra.gmra.mxu1 %vm861_vm1, %v852_v5  ;;  %1639 = vmatprep.subr.bf16.mxu0 %v1707_v7  ;;  %v1712_v16 = vld [vmem:[%s2256_s0 + $0x20] sm:$0xff]   ;;  %v1713_v17 = vld [vmem:[%s2256_s0 + $0x28] sm:$0xff]   ;;  %v1714_v18 = vld [vmem:[%s2256_s0 + $0x30] sm:$0xff]  }
   0x7   :  { %1641 = vmatprep.mubr.msk.bf16.mxu0 %vm264_vm2, %v1708_v8  ;;  %1013 = vmatprep.mubr.f32.mxu1 %v1817_v3  ;;  %v1715_v19 = vld [vmem:[%s2256_s0 + $0x38] sm:$0xff]   ;;  %v1716_v20 = vld [vmem:[%s2256_s0 + $0x40] sm:$0xff]   ;;  %v1717_v24 = vld [vmem:[%s2256_s0 + $0x48] sm:$0xff]  }
   0x8   :  { %1545 = vmatprep.subr.msk.mxu1 %vm865_vm0, %v860_v11  ;;  %v1740_v21 = vld [vmem:[%s2257_s4 + $0x70] ss:$8 sps:$4 sm:$0xff]   ;;  %v1742_v22 = vld [vmem:[%s2257_s4 + $0x74] ss:$8 sps:$4 sm:$0xff]   ;;  %v1745_v23 = vld [vmem:[%s2257_s4 + $0x64] ss:$8 sps:$4 sm:$0xff]  }
   0x9   :  { %1640 = vmatpush3.bf16.msra.mxu0 %v1707_v7  ;;  %1546 = vmatpush1.msk.msra.mxu1 %vm865_vm0, %v859_v12  ;;  %v1718_v25 = vld [vmem:[%s2256_s0 + $0x50] sm:$0xff]   ;;  %v1743_v26 = vld [vmem:[%s2257_s4 + $0x60] ss:$8 sps:$4 sm:$0xff]   ;;  %v1751_v29 = vld [vmem:[%s2257_s4 + $0x44] ss:$8 sps:$4 sm:$0xff]  }
   0xa   :  { %979 = vmatprep.subr.mxu1 %v856_v13  ;;  %v1748_v27 = vld [vmem:[%s2257_s4 + $0x54] ss:$8 sps:$4 sm:$0xff]   ;;  %v1746_v28 = vld [vmem:[%s2257_s4 + $0x50] ss:$8 sps:$4 sm:$0xff]   ;;  %v1720_v31 = vld [vmem:[%s2256_s0 + $0x60] sm:$0xff]  }
   0xb   :  { %980 = vmatpush1.msra.mxu1 %v855_v14  ;;  %v1719_v30 = vld [vmem:[%s2256_s0 + $0x58] sm:$0xff]   ;;  %v1749_v32 = vld [vmem:[%s2257_s4 + $0x40] ss:$8 sps:$4 sm:$0xff]   ;;  %v1757_v35 = vld [vmem:[%s2257_s4 + $0x24] ss:$8 sps:$4 sm:$0xff]  }
   0xc   :  { %1642 = vmatmul.mubr.msk.bf16.vlgmr.msra.gmra.mxu0 %vm264_vm2, %v1709_v9  ;;  %1547 = vmatmul.mubr.msk.f32.vlgmr.msra.gmra.mxu1 %vm861_vm1, %v852_v5  ;;  %v1754_v33 = vld [vmem:[%s2257_s4 + $0x34] ss:$8 sps:$4 sm:$0xff]   ;;  %v1752_v34 = vld [vmem:[%s2257_s4 + $0x30] ss:$8 sps:$4 sm:$0xff]   ;;  %v1721_v36 = vld [vmem:[%s2256_s0 + $0x68] sm:$0xff]  }
   0xd   :  { %1645 = vmatprep.mubr.msk.bf16.mxu0 %vm264_vm2, %v1710_v10  ;;  %1345 = vmatprep.subr.bf16.mxu1 %v1742_v22  ;;  %v1722_v37 = vld [vmem:[%s2256_s0 + $0x70] sm:$0xff]   ;;  %v1755_v38 = vld [vmem:[%s2257_s4 + $0x20] ss:$8 sps:$4 sm:$0xff]   ;;  %v1763_v41 = vld [vmem:[%s2257_s4 + $0x4] ss:$8 sps:$4 sm:$0xff]  }
   0xe   :  { %1346 = vmatpush1.bf16.msra.mxu1 %v1740_v21  ;;  %v1760_v39 = vld [vmem:[%s2257_s4 + $0x14] ss:$8 sps:$4 sm:$0xff]   ;;  %v1758_v40 = vld [vmem:[%s2257_s4 + $0x10] ss:$8 sps:$4 sm:$0xff]   ;;  %v1724_v43 = vld [vmem:[%s2256_s0 + $0x80] sm:$0xff]  }
   0xf   :  { %1347 = vmatprep.subr.bf16.mxu1 %v1745_v23  ;;  %v1723_v42 = vld [vmem:[%s2256_s0 + $0x78] sm:$0xff]   ;;  %v1761_v44 = vld [vmem:[%s2257_s4] ss:$8 sps:$4 sm:$0xff]   ;;  %v1769_v47 = vld [vmem:[%s2257_s4 + $0xe4] ss:$8 sps:$4 sm:$0xff]  }
  0x10   :  { %v1766_v45 = vld [vmem:[%s2257_s4 + $0xf4] ss:$8 sps:$4 sm:$0xff]   ;;  %v1764_v46 = vld [vmem:[%s2257_s4 + $0xf0] ss:$8 sps:$4 sm:$0xff]   ;;  %v1725_v48 = vld [vmem:[%s2256_s0 + $0x88] sm:$0xff]  }
  0x11   :  { %v1726_v49 = vld [vmem:[%s2256_s0 + $0x90] sm:$0xff]   ;;  %v1767_v50 = vld [vmem:[%s2257_s4 + $0xe0] ss:$8 sps:$4 sm:$0xff]   ;;  %v1775_v53 = vld [vmem:[%s2257_s4 + $0xc4] ss:$8 sps:$4 sm:$0xff]  }
  0x12   :  { %1348 = vmatpush1.bf16.msra.mxu1 %v1743_v26  ;;  %v1772_v51 = vld [vmem:[%s2257_s4 + $0xd4] ss:$8 sps:$4 sm:$0xff]   ;;  %v1770_v52 = vld [vmem:[%s2257_s4 + $0xd0] ss:$8 sps:$4 sm:$0xff]   ;;  %v1728_v55 = vld [vmem:[%s2256_s0 + $0xa0] sm:$0xff]  }
  0x13   :  { %1349 = vmatprep.subr.bf16.mxu1 %v1748_v27  ;;  %v1727_v54 = vld [vmem:[%s2256_s0 + $0x98] sm:$0xff]   ;;  %v1773_v56 = vld [vmem:[%s2257_s4 + $0xc0] ss:$8 sps:$4 sm:$0xff]   ;;  %v1781_v59 = vld [vmem:[%s2257_s4 + $0xa4] ss:$8 sps:$4 sm:$0xff]  }
  0x14   :  { %1646 = vmatmul.mubr.msk.bf16.gmra.mxu0 %vm264_vm2, %v1711_v15  ;;  %v1778_v57 = vld [vmem:[%s2257_s4 + $0xb4] ss:$8 sps:$4 sm:$0xff]   ;;  %v1776_v58 = vld [vmem:[%s2257_s4 + $0xb0] ss:$8 sps:$4 sm:$0xff]   ;;  %v1729_v60 = vld [vmem:[%s2256_s0 + $0xa8] sm:$0xff]  }
  0x15   :  { %1649 = vmatprep.mubr.msk.bf16.mxu0 %vm264_vm2, %v1712_v16  ;;  %v1730_v61 = vld [vmem:[%s2256_s0 + $0xb0] sm:$0xff]   ;;  %v1779_v62 = vld [vmem:[%s2257_s4 + $0xa0] ss:$8 sps:$4 sm:$0xff]   ;;  %v1787_v1 = vld [vmem:[%s2257_s4 + $0x84] ss:$8 sps:$4 sm:$0xff]  }
  0x16   :  { %1350 = vmatpush1.bf16.msra.mxu1 %v1746_v28  ;;  %v1784_v63 = vld [vmem:[%s2257_s4 + $0x94] ss:$8 sps:$4 sm:$0xff]   ;;  %v1782_v0 = vld [vmem:[%s2257_s4 + $0x90] ss:$8 sps:$4 sm:$0xff]   ;;  %v1732_v3 = vld [vmem:[%s2256_s0 + $0xc0] sm:$0xff]  }
  0x17   :  { %1351 = vmatprep.subr.bf16.mxu1 %v1751_v29  ;;  %v1731_v2 = vld [vmem:[%s2256_s0 + $0xb8] sm:$0xff]   ;;  %v1785_v4 = vld [vmem:[%s2257_s4 + $0x80] ss:$8 sps:$4 sm:$0xff]   ;;  %v1734_v7 = vld [vmem:[%s2256_s0 + $0xd0] sm:$0xff]  }
  0x18   :  { %v1790_v5 = vld [vmem:[%s2257_s4 + $0x174] ss:$8 sps:$4 sm:$0xff]   ;;  %v1733_v6 = vld [vmem:[%s2256_s0 + $0xc8] sm:$0xff]   ;;  %v1736_v9 = vld [vmem:[%s2256_s0 + $0xe0] sm:$0xff]  }
  0x19   :  { %v1735_v8 = vld [vmem:[%s2256_s0 + $0xd8] sm:$0xff]   ;;  %v1737_v10 = vld [vmem:[%s2256_s0 + $0xe8] sm:$0xff]   ;;  %v1738_v11 = vld [vmem:[%s2256_s0 + $0xf0] sm:$0xff]  }
  0x1a   :  { %1352 = vmatpush1.bf16.msra.mxu1 %v1749_v32  ;;  %v1739_v12 = vld [vmem:[%s2256_s0 + $0xf8] sm:$0xff]   ;;  %v1791_v22 = vld [vmem:[%s2257_s4 + $0x160] ss:$8 sps:$4 sm:$0xff]  }
  0x1b   :  { %1353 = vmatprep.subr.bf16.mxu1 %v1754_v33 }
  0x1c   :  { %1650 = vmatmul.mubr.msk.bf16.gmra.mxu0 %vm264_vm2, %v1713_v17 }
  0x1d   :  { %1653 = vmatprep.mubr.msk.bf16.mxu0 %vm264_vm2, %v1714_v18  ;;  %v1788_v18 = vld [vmem:[%s2257_s4 + $0x170] ss:$8 sps:$4 sm:$0xff]  }
  0x1e   :  { %1354 = vmatpush1.bf16.msra.mxu1 %v1752_v34 }
  0x1f   :  { %1355 = vmatprep.subr.bf16.mxu1 %v1757_v35 }
  0x22   :  { %1356 = vmatpush1.bf16.msra.mxu1 %v1755_v38 }
  0x23   :  { %1357 = vmatprep.subr.bf16.mxu1 %v1760_v39 }
  0x24   :  { %1654 = vmatmul.mubr.msk.bf16.gmra.mxu0 %vm264_vm2, %v1715_v19 }
  0x25   :  { %1657 = vmatprep.mubr.msk.bf16.mxu0 %vm264_vm2, %v1716_v20  ;;  %v1793_v20 = vld [vmem:[%s2257_s4 + $0x164] ss:$8 sps:$4 sm:$0xff]  }
  0x26   :  { %1358 = vmatpush1.bf16.msra.mxu1 %v1758_v40 }
  0x27   :  { %1359 = vmatprep.subr.bf16.mxu1 %v1763_v41 }
  0x2a   :  { %1360 = vmatpush1.bf16.msra.mxu1 %v1761_v44 }
  0x2b   :  { %1361 = vmatprep.subr.bf16.mxu1 %v1766_v45 }
  0x2c   :  { %1658 = vmatmul.mubr.msk.bf16.gmra.mxu0 %vm264_vm2, %v1717_v24 }
  0x2d   :  { %1661 = vmatprep.mubr.msk.bf16.mxu0 %vm264_vm2, %v1718_v25  ;;  %v1796_v25 = vld [vmem:[%s2257_s4 + $0x154] ss:$8 sps:$4 sm:$0xff]  }
  0x2e   :  { %1362 = vmatpush2.bf16.msra.mxu1 %v1764_v46  ;;  %v1802_v46 = vld [vmem:[%s2257_s4 + $0x134] ss:$8 sps:$4 sm:$0xff]  }
  0x2f   :  { %1363 = vmatprep.subr.bf16.mxu1 %v1769_v47 }
  0x32   :  { %1364 = vmatpush2.bf16.msra.mxu1 %v1767_v50 }
  0x33   :  { %1365 = vmatprep.subr.bf16.mxu1 %v1772_v51 }
  0x34   :  { %1662 = vmatmul.mubr.msk.bf16.gmra.mxu0 %vm264_vm2, %v1719_v30  ;;  %v1794_v30 = vld [vmem:[%s2257_s4 + $0x150] ss:$8 sps:$4 sm:$0xff]  }
  0x35   :  { %1665 = vmatprep.mubr.msk.bf16.mxu0 %vm264_vm2, %v1720_v31 }
  0x36   :  { %1366 = vmatpush2.bf16.msra.mxu1 %v1770_v52  ;;  %v1800_v52 = vld [vmem:[%s2257_s4 + $0x130] ss:$8 sps:$4 sm:$0xff]  }
  0x37   :  { %1367 = vmatprep.subr.bf16.mxu1 %v1775_v53 }
  0x3a   :  { %1368 = vmatpush2.bf16.msra.mxu1 %v1773_v56  ;;  %v1805_v56 = vld [vmem:[%s2257_s4 + $0x124] ss:$8 sps:$4 sm:$0xff]  }
  0x3b   :  { %1369 = vmatprep.subr.bf16.mxu1 %v1778_v57 }
  0x3c   :  { %1666 = vmatmul.mubr.msk.bf16.gmra.mxu0 %vm264_vm2, %v1721_v36  ;;  %v1799_v36 = vld [vmem:[%s2257_s4 + $0x144] ss:$8 sps:$4 sm:$0xff]  }
  0x3d   :  { %1669 = vmatprep.mubr.msk.bf16.mxu0 %vm264_vm2, %v1722_v37 }
  0x3e   :  { %1370 = vmatpush2.bf16.msra.mxu1 %v1776_v58 }
  0x3f   :  { %1371 = vmatprep.subr.bf16.mxu1 %v1781_v59 }
  0x42   :  { %1372 = vmatpush2.bf16.msra.mxu1 %v1779_v62  ;;  %v1803_v62 = vld [vmem:[%s2257_s4 + $0x120] ss:$8 sps:$4 sm:$0xff]  }
  0x43   :  { %1373 = vmatprep.subr.bf16.mxu1 %v1784_v63 }
  0x44   :  { %1670 = vmatmul.mubr.msk.bf16.gmra.mxu0 %vm264_vm2, %v1723_v42  ;;  %v1797_v42 = vld [vmem:[%s2257_s4 + $0x140] ss:$8 sps:$4 sm:$0xff]  }
  0x45   :  { %1673 = vmatprep.mubr.msk.bf16.mxu0 %vm264_vm2, %v1724_v43 }
  0x46   :  { %1374 = vmatpush2.bf16.msra.mxu1 %v1782_v0 }
  0x47   :  { %1375 = vmatprep.subr.bf16.mxu1 %v1787_v1 }
  0x4a   :  { %1376 = vmatpush2.bf16.msra.mxu1 %v1785_v4 }
  0x4b   :  { %1386 = vmatprep.subr.bf16.mxu1 %v1790_v5 }
  0x4c   :  { %1674 = vmatmul.mubr.msk.bf16.gmra.mxu0 %vm264_vm2, %v1725_v48 }
  0x4d   :  { %1677 = vmatprep.mubr.msk.bf16.mxu0 %vm264_vm2, %v1726_v49 }
  0x54   :  { %1678 = vmatmul.mubr.msk.bf16.gmra.mxu0 %vm264_vm2, %v1727_v54 }
  0x55   :  { %1681 = vmatprep.mubr.msk.bf16.mxu0 %vm264_vm2, %v1728_v55 }
  0x5c   :  { %1682 = vmatmul.mubr.msk.bf16.gmra.mxu0 %vm264_vm2, %v1729_v60 }
  0x5d   :  { %1685 = vmatprep.mubr.msk.bf16.mxu0 %vm264_vm2, %v1730_v61 }
  0x64   :  { %1686 = vmatmul.mubr.msk.bf16.gmra.mxu0 %vm264_vm2, %v1731_v2  ;;  %v1808_v2 = vld [vmem:[%s2257_s4 + $0x114] ss:$8 sps:$4 sm:$0xff]  }
  0x65   :  { %1689 = vmatprep.mubr.msk.bf16.mxu0 %vm264_vm2, %v1732_v3 }
  0x6c   :  { %1690 = vmatmul.mubr.msk.bf16.gmra.mxu0 %vm264_vm2, %v1733_v6 }
  0x6d   :  { %1693 = vmatprep.mubr.msk.bf16.mxu0 %vm264_vm2, %v1734_v7 }
  0x74   :  { %1694 = vmatmul.mubr.msk.bf16.gmra.mxu0 %vm264_vm2, %v1735_v8  ;;  %v1806_v8 = vld [vmem:[%s2257_s4 + $0x110] ss:$8 sps:$4 sm:$0xff]  }
  0x75   :  { %1697 = vmatprep.mubr.msk.bf16.mxu0 %vm264_vm2, %v1736_v9 }
  0x7c   :  { %1698 = vmatmul.mubr.msk.bf16.gmra.mxu0 %vm264_vm2, %v1737_v10 }
  0x7d   :  { %1701 = vmatprep.mubr.msk.bf16.mxu0 %vm264_vm2, %v1738_v11 }
  0x84   :  { %1702 = vmatmul.mubr.msk.bf16.gmra.mxu0 %vm264_vm2, %v1739_v12  ;;  %v1811_v12 = vld [vmem:[%s2257_s4 + $0x104] ss:$8 sps:$4 sm:$0xff]  }
  0xc6   :  { %v944_v13 = vpop.f32.mrf.mxu1 }
  0xc7   :  { %v1020_v14 = vmax.f32 %v944_v13, 0.0 }
  0xc8   :  { %v946_v15 = vpop.f32.mrf.mxu1 }
  0xc9   :  { %v1021_v16 = vmax.f32 %v946_v15, 0.0  ;;  %v1024_v19 = vpack.c.bf16 %v1020_v14, %v1020_v14  ;;  %v1078_v15 = vld [vmem:[%s2257_s4 + $0x190] sm:$0xff] }
  0xcb   :  { %v1025_v17 = vpack.c.bf16 %v1021_v16, %v1021_v16 }
  0xcc   :  { %v1643_v21 = vpop.f32.mrf.mxu0  ;;  %v2131_v26 = vpop.f32.mrf.mxu1 }
  0xcd   :  { %1377 = vmatprep.mubr.bf16.mxu1 %v1025_v17  ;;  %v652_v28 = vmax.f32 %v1643_v21, 0.0 }
  0xce   :  { %1378 = vmatmul.mubr.bf16.vlgmr.msra.gmra.mxu1 %v1024_v19  ;;  %v395_v23 = vpop.f32.mrf.mxu0  ;;  %v1017_v29 = vpop.f32.mrf.mxu1  ;;  %v1809_v19 = vld [vmem:[%s2257_s4 + $0x100] ss:$8 sps:$4 sm:$0xff]  }
  0xcf   :  { %1387 = vmatpush1.bf16.msra.mxu1 %v1788_v18  ;;  %v650_v24 = vmax.f32 %v395_v23, 0.0  ;;  %v1023_v32 = vmax.f32 %v1017_v29, 0.0  ;;  %v717_v39 = vsel %vm264_vm2, %v652_v28, 0.0  ;;  %v1599_v23 = vcombine.high %v1078_v15, %v1078_v15 }
  0xd0   :  { %1388 = vmatprep.subr.bf16.mxu1 %v1793_v20  ;;  %v1644_v27 = vpop.f32.mrf.mxu0 }
  0xd1   :  { %v714_v33 = vsel %vm264_vm2, %v650_v24, 0.0  ;;  %v653_v34 = vmax.f32 %v1644_v27, 0.0  ;;  %v1027_v38 = vpack.c.bf16 %v1023_v32, %v1023_v32  ;;  %v1598_v24 = vcombine.low %v1078_v15, %v1078_v15 }
  0xd2   :  { %v398_v31 = vpop.f32.mrf.mxu0 }
  0xd3   :  { %1389 = vmatpush1.bf16.msra.mxu1 %v1791_v22  ;;  %v651_v35 = vmax.f32 %v398_v31, 0.0  ;;  %1601 = vmatprep.mubr.msk.bf16.mxu1 %vm1334_vm3, %v1027_v38  ;;  %v719_v44 = vsel %vm264_vm2, %v653_v34, 0.0 }
  0xd4   :  { %1390 = vmatprep.subr.bf16.mxu1 %v1796_v25  ;;  %v1647_v37 = vpop.f32.mrf.mxu0 }
  0xd5   :  { %v715_v40 = vsel %vm264_vm2, %v651_v35, 0.0  ;;  %v656_v49 = vmax.f32 %v1647_v37, 0.0  ;;  %v1816_v35 = vld [vmem:[%s2257_s4 + $0x184] ss:$8 sps:$4 sm:$0xff]  }
  0xd6   :  { %v716_v41 = vadd.f32 %v715_v40, %v714_v33  ;;  %v411_v43 = vpop.f32.mrf.mxu0  ;;  %v1340_v33 = vsel %vm1338_vm4, %v1598_v24, 0 }
  0xd7   :  { %1391 = vmatpush1.bf16.msra.mxu1 %v1794_v30  ;;  %v654_v45 = vmax.f32 %v411_v43, 0.0  ;;  %v725_v59 = vsel %vm264_vm2, %v656_v49, 0.0  ;;  %v1022_v43 = vmax.f32 %v2131_v26, 0.0 }
  0xd8   :  { %1392 = vmatprep.subr.bf16.mxu1 %v1799_v36  ;;  %v718_v47 = vadd.f32 %v717_v39, %v716_v41  ;;  %v1648_v48 = vpop.f32.mrf.mxu0  ;;  %v1814_v41 = vld [vmem:[%s2257_s4 + $0x180] ss:$8 sps:$4 sm:$0xff]  }
  0xd9   :  { %v721_v50 = vsel %vm264_vm2, %v654_v45, 0.0  ;;  %v657_v54 = vmax.f32 %v1648_v48, 0.0 }
  0xda   :  { %v720_v51 = vadd.f32 %v719_v44, %v718_v47  ;;  %v414_v53 = vpop.f32.mrf.mxu0 }
  0xdb   :  { %1393 = vmatpush1.bf16.msra.mxu1 %v1797_v42  ;;  %v655_v55 = vmax.f32 %v414_v53, 0.0  ;;  %v727_v0 = vsel %vm264_vm2, %v657_v54, 0.0 }
  0xdc   :  { %1394 = vmatprep.subr.bf16.mxu1 %v1802_v46  ;;  %v722_v57 = vadd.f32 %v721_v50, %v720_v51  ;;  %v1651_v58 = vpop.f32.mrf.mxu0 }
  0xdd   :  { %v723_v60 = vsel %vm264_vm2, %v655_v55, 0.0  ;;  %v660_v5 = vmax.f32 %v1651_v58, 0.0 }
  0xde   :  { %v724_v61 = vadd.f32 %v723_v60, %v722_v57  ;;  %v427_v63 = vpop.f32.mrf.mxu0 }
  0xdf   :  { %1395 = vmatpush1.bf16.msra.mxu1 %v1800_v52  ;;  %v658_v1 = vmax.f32 %v427_v63, 0.0  ;;  %v733_v16 = vsel %vm264_vm2, %v660_v5, 0.0  ;;  %v1026_v52 = vpack.c.bf16 %v1022_v43, %v1022_v43 }
  0xe0   :  { %1396 = vmatprep.subr.bf16.mxu1 %v1805_v56  ;;  %v726_v3 = vadd.f32 %v725_v59, %v724_v61  ;;  %v1652_v4 = vpop.f32.mrf.mxu0 }
  0xe1   :  { %v729_v6 = vsel %vm264_vm2, %v658_v1, 0.0  ;;  %v661_v10 = vmax.f32 %v1652_v4, 0.0 }
  0xe2   :  { %v728_v7 = vadd.f32 %v727_v0, %v726_v3  ;;  %v430_v9 = vpop.f32.mrf.mxu0 }
  0xe3   :  { %1397 = vmatpush1.bf16.msra.mxu1 %v1803_v62  ;;  %v659_v11 = vmax.f32 %v430_v9, 0.0  ;;  %v735_v21 = vsel %vm264_vm2, %v661_v10, 0.0 }
  0xe4   :  { %1398 = vmatprep.subr.bf16.mxu1 %v1808_v2  ;;  %v730_v13 = vadd.f32 %v729_v6, %v728_v7  ;;  %v1655_v14 = vpop.f32.mrf.mxu0 }
  0xe5   :  { %v731_v17 = vsel %vm264_vm2, %v659_v11, 0.0  ;;  %v664_v28 = vmax.f32 %v1655_v14, 0.0 }
  0xe6   :  { %v732_v18 = vadd.f32 %v731_v17, %v730_v13  ;;  %v443_v20 = vpop.f32.mrf.mxu0 }
  0xe7   :  { %1399 = vmatpush1.bf16.msra.mxu1 %v1806_v8  ;;  %v662_v22 = vmax.f32 %v443_v20, 0.0  ;;  %v741_v38 = vsel %vm264_vm2, %v664_v28, 0.0 }
  0xe8   :  { %1400 = vmatprep.subr.bf16.mxu1 %v1811_v12  ;;  %v734_v25 = vadd.f32 %v733_v16, %v732_v18  ;;  %v1656_v27 = vpop.f32.mrf.mxu0 }
  0xe9   :  { %v737_v29 = vsel %vm264_vm2, %v662_v22, 0.0  ;;  %v665_v32 = vmax.f32 %v1656_v27, 0.0 }
  0xea   :  { %v736_v30 = vadd.f32 %v735_v21, %v734_v25  ;;  %v446_v31 = vpop.f32.mrf.mxu0 }
  0xeb   :  { %1401 = vmatpush1.bf16.msra.mxu1 %v1809_v19  ;;  %v663_v34 = vmax.f32 %v446_v31, 0.0  ;;  %v743_v44 = vsel %vm264_vm2, %v665_v32, 0.0 }
  0xec   :  { %1600 = vmatprep.subr.msk.bf16.mxu1 %vm1338_vm4, %v1599_v23  ;;  %v738_v36 = vadd.f32 %v737_v29, %v736_v30  ;;  %v1659_v37 = vpop.f32.mrf.mxu0 }
  0xed   :  { %v739_v39 = vsel %vm264_vm2, %v663_v34, 0.0  ;;  %v668_v48 = vmax.f32 %v1659_v37, 0.0 }
  0xee   :  { %v740_v40 = vadd.f32 %v739_v39, %v738_v36  ;;  %v459_v42 = vpop.f32.mrf.mxu0 }
  0xef   :  { %1415 = vmatpush2.bf16.msra.mxu1 %v1340_v33  ;;  %v666_v45 = vmax.f32 %v459_v42, 0.0  ;;  %v749_v57 = vsel %vm264_vm2, %v668_v48, 0.0 }
  0xf0   :  { %1416 = vmatprep.subr.bf16.mxu1 %v1816_v35  ;;  %v742_v46 = vadd.f32 %v741_v38, %v740_v40  ;;  %v1660_v47 = vpop.f32.mrf.mxu0 }
  0xf1   :  { %v745_v49 = vsel %vm264_vm2, %v666_v45, 0.0  ;;  %v669_v53 = vmax.f32 %v1660_v47, 0.0 }
  0xf2   :  { %v744_v50 = vadd.f32 %v743_v44, %v742_v46  ;;  %v462_v51 = vpop.f32.mrf.mxu0 }
  0xf3   :  { %1417 = vmatpush2.bf16.msra.mxu1 %v1814_v41  ;;  %v667_v54 = vmax.f32 %v462_v51, 0.0  ;;  %v751_v60 = vsel %vm264_vm2, %v669_v53, 0.0 }
  0xf4   :  { %v746_v55 = vadd.f32 %v745_v49, %v744_v50  ;;  %v1663_v56 = vpop.f32.mrf.mxu0 }
  0xf5   :  { %v747_v26 = vsel %vm264_vm2, %v667_v54, 0.0  ;;  %v672_v0 = vmax.f32 %v1663_v56, 0.0 }
  0xf6   :  { %1419 = vmatmul.mubr.bf16.vlgmr.msra.gmra.mxu1 %v1026_v52  ;;  %v748_v58 = vadd.f32 %v747_v26, %v746_v55  ;;  %v475_v59 = vpop.f32.mrf.mxu0 }
  0xf7   :  { %v670_v61 = vmax.f32 %v475_v59, 0.0  ;;  %v757_v8 = vsel %vm264_vm2, %v672_v0, 0.0 }
  0xf8   :  { %v750_v62 = vadd.f32 %v749_v57, %v748_v58  ;;  %v1664_v63 = vpop.f32.mrf.mxu0 }
  0xf9   :  { %v753_v1 = vsel %vm264_vm2, %v670_v61, 0.0  ;;  %v673_v4 = vmax.f32 %v1664_v63, 0.0 }
  0xfa   :  { %v752_v2 = vadd.f32 %v751_v60, %v750_v62  ;;  %v478_v3 = vpop.f32.mrf.mxu0 }
  0xfb   :  { %v671_v5 = vmax.f32 %v478_v3, 0.0  ;;  %v759_v12 = vsel %vm264_vm2, %v673_v4, 0.0 }
  0xfc   :  { %v754_v6 = vadd.f32 %v753_v1, %v752_v2  ;;  %v1667_v7 = vpop.f32.mrf.mxu0 }
  0xfd   :  { %v755_v9 = vsel %vm264_vm2, %v671_v5, 0.0  ;;  %v676_v16 = vmax.f32 %v1667_v7, 0.0 }
  0xfe   :  { %v756_v10 = vadd.f32 %v755_v9, %v754_v6  ;;  %v491_v11 = vpop.f32.mrf.mxu0 }
  0xff   :  { %v674_v13 = vmax.f32 %v491_v11, 0.0  ;;  %v765_v24 = vsel %vm264_vm2, %v676_v16, 0.0 }
 0x100   :  { %v758_v14 = vadd.f32 %v757_v8, %v756_v10  ;;  %v1668_v15 = vpop.f32.mrf.mxu0 }
 0x101   :  { %v761_v17 = vsel %vm264_vm2, %v674_v13, 0.0  ;;  %v677_v20 = vmax.f32 %v1668_v15, 0.0 }
 0x102   :  { %v760_v18 = vadd.f32 %v759_v12, %v758_v14  ;;  %v494_v19 = vpop.f32.mrf.mxu0 }
 0x103   :  { %v675_v21 = vmax.f32 %v494_v19, 0.0  ;;  %v767_v29 = vsel %vm264_vm2, %v677_v20, 0.0 }
 0x104   :  { %v762_v22 = vadd.f32 %v761_v17, %v760_v18  ;;  %v1671_v23 = vpop.f32.mrf.mxu0 }
 0x105   :  { %v763_v25 = vsel %vm264_vm2, %v675_v21, 0.0  ;;  %v680_v33 = vmax.f32 %v1671_v23, 0.0 }
 0x106   :  { %v764_v27 = vadd.f32 %v763_v25, %v762_v22  ;;  %v507_v28 = vpop.f32.mrf.mxu0 }
 0x107   :  { %v678_v30 = vmax.f32 %v507_v28, 0.0  ;;  %v773_v41 = vsel %vm264_vm2, %v680_v33, 0.0 }
 0x108   :  { %v766_v31 = vadd.f32 %v765_v24, %v764_v27  ;;  %v1672_v32 = vpop.f32.mrf.mxu0 }
 0x109   :  { %v769_v34 = vsel %vm264_vm2, %v678_v30, 0.0  ;;  %v681_v37 = vmax.f32 %v1672_v32, 0.0 }
 0x10a   :  { %v768_v35 = vadd.f32 %v767_v29, %v766_v31  ;;  %v510_v36 = vpop.f32.mrf.mxu0 }
 0x10b   :  { %v679_v38 = vmax.f32 %v510_v36, 0.0  ;;  %v775_v45 = vsel %vm264_vm2, %v681_v37, 0.0 }
 0x10c   :  { %v770_v39 = vadd.f32 %v769_v34, %v768_v35  ;;  %v1675_v40 = vpop.f32.mrf.mxu0 }
 0x10d   :  { %v771_v42 = vsel %vm264_vm2, %v679_v38, 0.0  ;;  %v684_v49 = vmax.f32 %v1675_v40, 0.0 }
 0x10e   :  { %v772_v43 = vadd.f32 %v771_v42, %v770_v39  ;;  %v523_v44 = vpop.f32.mrf.mxu0 }
 0x10f   :  { %v682_v46 = vmax.f32 %v523_v44, 0.0  ;;  %v786_v56 = vsel %vm264_vm2, %v684_v49, 0.0 }
 0x110   :  { %v774_v47 = vadd.f32 %v773_v41, %v772_v43  ;;  %v1676_v48 = vpop.f32.mrf.mxu0 }
 0x111   :  { %v783_v52 = vsel %vm264_vm2, %v682_v46, 0.0  ;;  %v685_v53 = vmax.f32 %v1676_v48, 0.0 }
 0x112   :  { %v2208_v50 = vadd.f32 %v775_v45, %v774_v47  ;;  %v526_v51 = vpop.f32.mrf.mxu0 }
 0x113   :  { %v683_v54 = vmax.f32 %v526_v51, 0.0  ;;  %v788_v59 = vsel %vm264_vm2, %v685_v53, 0.0 }
 0x114   :  { %v1679_v55 = vpop.f32.mrf.mxu0 }
 0x115   :  { %v784_v57 = vsel %vm264_vm2, %v683_v54, 0.0  ;;  %v688_v63 = vmax.f32 %v1679_v55, 0.0 }
 0x116   :  { %v785_v26 = vadd.f32 %v784_v57, %v783_v52  ;;  %v539_v58 = vpop.f32.mrf.mxu0 }
 0x117   :  { %v686_v60 = vmax.f32 %v539_v58, 0.0  ;;  %v794_v7 = vsel %vm264_vm2, %v688_v63, 0.0 }
 0x118   :  { %v787_v61 = vadd.f32 %v786_v56, %v785_v26  ;;  %v1680_v62 = vpop.f32.mrf.mxu0 }
 0x119   :  { %v790_v0 = vsel %vm264_vm2, %v686_v60, 0.0  ;;  %v689_v3 = vmax.f32 %v1680_v62, 0.0 }
 0x11a   :  { %v789_v1 = vadd.f32 %v788_v59, %v787_v61  ;;  %v542_v2 = vpop.f32.mrf.mxu0 }
 0x11b   :  { %v687_v4 = vmax.f32 %v542_v2, 0.0  ;;  %v796_v11 = vsel %vm264_vm2, %v689_v3, 0.0 }
 0x11c   :  { %v791_v5 = vadd.f32 %v790_v0, %v789_v1  ;;  %v1683_v6 = vpop.f32.mrf.mxu0 }
 0x11d   :  { %v792_v8 = vsel %vm264_vm2, %v687_v4, 0.0  ;;  %v692_v15 = vmax.f32 %v1683_v6, 0.0 }
 0x11e   :  { %v793_v9 = vadd.f32 %v792_v8, %v791_v5  ;;  %v555_v10 = vpop.f32.mrf.mxu0 }
 0x11f   :  { %v690_v12 = vmax.f32 %v555_v10, 0.0  ;;  %v802_v23 = vsel %vm264_vm2, %v692_v15, 0.0 }
 0x120   :  { %v795_v13 = vadd.f32 %v794_v7, %v793_v9  ;;  %v1684_v14 = vpop.f32.mrf.mxu0 }
 0x121   :  { %v798_v16 = vsel %vm264_vm2, %v690_v12, 0.0  ;;  %v693_v19 = vmax.f32 %v1684_v14, 0.0 }
 0x122   :  { %v797_v17 = vadd.f32 %v796_v11, %v795_v13  ;;  %v558_v18 = vpop.f32.mrf.mxu0 }
 0x123   :  { %v691_v20 = vmax.f32 %v558_v18, 0.0  ;;  %v804_v28 = vsel %vm264_vm2, %v693_v19, 0.0 }
 0x124   :  { %v799_v21 = vadd.f32 %v798_v16, %v797_v17  ;;  %v1687_v22 = vpop.f32.mrf.mxu0 }
 0x125   :  { %v800_v24 = vsel %vm264_vm2, %v691_v20, 0.0  ;;  %v696_v32 = vmax.f32 %v1687_v22, 0.0 }
 0x126   :  { %v801_v25 = vadd.f32 %v800_v24, %v799_v21  ;;  %v571_v27 = vpop.f32.mrf.mxu0 }
 0x127   :  { %v694_v29 = vmax.f32 %v571_v27, 0.0  ;;  %v810_v40 = vsel %vm264_vm2, %v696_v32, 0.0 }
 0x128   :  { %v803_v30 = vadd.f32 %v802_v23, %v801_v25  ;;  %v1688_v31 = vpop.f32.mrf.mxu0 }
 0x129   :  { %v806_v33 = vsel %vm264_vm2, %v694_v29, 0.0  ;;  %v697_v36 = vmax.f32 %v1688_v31, 0.0  ;;  %v777_v31 = vrot.slane %v2208_v50, 4 }
 0x12a   :  { %v805_v34 = vadd.f32 %v804_v28, %v803_v30  ;;  %v574_v35 = vpop.f32.mrf.mxu0 }
 0x12b   :  { %v695_v37 = vmax.f32 %v574_v35, 0.0  ;;  %v812_v44 = vsel %vm264_vm2, %v697_v36, 0.0 }
 0x12c   :  { %v807_v38 = vadd.f32 %v806_v33, %v805_v34  ;;  %v1691_v39 = vpop.f32.mrf.mxu0 }
 0x12d   :  { %v808_v41 = vsel %vm264_vm2, %v695_v37, 0.0  ;;  %v700_v48 = vmax.f32 %v1691_v39, 0.0 }
 0x12e   :  { %v809_v42 = vadd.f32 %v808_v41, %v807_v38  ;;  %v587_v43 = vpop.f32.mrf.mxu0 }
 0x12f   :  { %v698_v45 = vmax.f32 %v587_v43, 0.0  ;;  %v818_v57 = vsel %vm264_vm2, %v700_v48, 0.0 }
 0x130   :  { %v811_v46 = vadd.f32 %v810_v40, %v809_v42  ;;  %v1692_v47 = vpop.f32.mrf.mxu0  ;;  %v778_v40 = vadd.f32 %v777_v31, %v2208_v50  ;;  %v1602_v50 = vld [vmem:[%s2258_s5] ss:$0 sm:$0xff] }
 0x131   :  { %v814_v49 = vsel %vm264_vm2, %v698_v45, 0.0  ;;  %v701_v53 = vmax.f32 %v1692_v47, 0.0 }
 0x132   :  { %v813_v51 = vadd.f32 %v812_v44, %v811_v46  ;;  %v590_v52 = vpop.f32.mrf.mxu0  ;;  %v779_v47 = vrot.slane %v778_v40, 2 }
 0x133   :  { %v699_v54 = vmax.f32 %v590_v52, 0.0  ;;  %v820_v60 = vsel %vm264_vm2, %v701_v53, 0.0 }
 0x134   :  { %v815_v55 = vadd.f32 %v814_v49, %v813_v51  ;;  %v1695_v56 = vpop.f32.mrf.mxu0  ;;  %v780_v51 = vadd.f32 %v779_v47, %v778_v40 }
 0x135   :  { %v816_v26 = vsel %vm264_vm2, %v699_v54, 0.0  ;;  %v704_v0 = vmax.f32 %v1695_v56, 0.0 }
 0x136   :  { %v817_v58 = vadd.f32 %v816_v26, %v815_v55  ;;  %v603_v59 = vpop.f32.mrf.mxu0  ;;  %v781_v54 = vrot.slane %v780_v51, 1 }
 0x137   :  { %v702_v61 = vmax.f32 %v603_v59, 0.0  ;;  %v826_v8 = vsel %vm264_vm2, %v704_v0, 0.0 }
 0x138   :  { %v819_v62 = vadd.f32 %v818_v57, %v817_v58  ;;  %v1696_v63 = vpop.f32.mrf.mxu0  ;;  %v782_v56 = vadd.f32 %v781_v54, %v780_v51 }
 0x139   :  { %v822_v1 = vsel %vm264_vm2, %v702_v61, 0.0  ;;  %v705_v4 = vmax.f32 %v1696_v63, 0.0 }
 0x13a   :  { %v821_v2 = vadd.f32 %v820_v60, %v819_v62  ;;  %v606_v3 = vpop.f32.mrf.mxu0  ;;  %v1437_v58 = vmul.f32 %v1602_v50, %v782_v56 }
 0x13b   :  { %v703_v5 = vmax.f32 %v606_v3, 0.0  ;;  %v828_v12 = vsel %vm264_vm2, %v705_v4, 0.0  ;;  %v1450_v3 = vlaneseq }
 0x13c   :  { %v823_v6 = vadd.f32 %v822_v1, %v821_v2  ;;  %v1699_v7 = vpop.f32.mrf.mxu0 }
 0x13d   :  { %v824_v9 = vsel %vm264_vm2, %v703_v5, 0.0  ;;  %v708_v16 = vmax.f32 %v1699_v7, 0.0  ;;  %v1451_v4 = vshrl.u32 %v1450_v3, 7 }
 0x13e   :  { %v825_v10 = vadd.f32 %v824_v9, %v823_v6  ;;  %v619_v11 = vpop.f32.mrf.mxu0  ;;  %v1430_v6 = vld [vmem:[%s2258_s5 + $0x1] sm:$0x3] }
 0x13f   :  { %v706_v13 = vmax.f32 %v619_v11, 0.0  ;;  %v834_v24 = vsel %vm264_vm2, %v708_v16, 0.0  ;;  %v1452_v5 = vsub.s32 0, %v1451_v4  ;;  %v1456_v7 = vsub.s32 1, %v1451_v4 }
 0x140   :  { %v827_v14 = vadd.f32 %v826_v8, %v825_v10  ;;  %v1700_v15 = vpop.f32.mrf.mxu0 }
 0x141   :  { %v830_v17 = vsel %vm264_vm2, %v706_v13, 0.0  ;;  %v709_v20 = vmax.f32 %v1700_v15, 0.0  ;;  %v1453_v10 = vrot.slane %v1430_v6, %v1452_v5 }
 0x142   :  { %v829_v18 = vadd.f32 %v828_v12, %v827_v14  ;;  %v622_v19 = vpop.f32.mrf.mxu0  ;;  %v1457_v14 = vrot.slane %v1430_v6, %v1456_v7 }
 0x143   :  { %v707_v21 = vmax.f32 %v622_v19, 0.0  ;;  %v836_v29 = vsel %vm264_vm2, %v709_v20, 0.0 }
 0x144   :  { %v831_v22 = vadd.f32 %v830_v17, %v829_v18  ;;  %v1703_v23 = vpop.f32.mrf.mxu0 }
 0x145   :  { %v832_v25 = vsel %vm264_vm2, %v707_v21, 0.0  ;;  %v712_v34 = vmax.f32 %v1703_v23, 0.0 }
 0x146   :  { %v833_v27 = vadd.f32 %v832_v25, %v831_v22  ;;  %v635_v28 = vpop.f32.mrf.mxu0 }
 0x147   :  { %v710_v30 = vmax.f32 %v635_v28, 0.0  ;;  %v842_v42 = vsel %vm264_vm2, %v712_v34, 0.0 }
 0x148   :  { %v835_v32 = vadd.f32 %v834_v24, %v833_v27  ;;  %v1704_v33 = vpop.f32.mrf.mxu0 }
 0x149   :  { %v838_v35 = vsel %vm264_vm2, %v710_v30, 0.0  ;;  %v713_v38 = vmax.f32 %v1704_v33, 0.0 }
 0x14a   :  { %v837_v36 = vadd.f32 %v836_v29, %v835_v32  ;;  %v638_v37 = vpop.f32.mrf.mxu0 }
 0x14b   :  { %v711_v39 = vmax.f32 %v638_v37, 0.0  ;;  %v844_v45 = vsel %vm264_vm2, %v713_v38, 0.0 }
 0x14c   :  { %v839_v41 = vadd.f32 %v838_v35, %v837_v36 }
 0x14d   :  { %v840_v43 = vsel %vm264_vm2, %v711_v39, 0.0 }
 0x14e   :  { %v841_v44 = vadd.f32 %v840_v43, %v839_v41 }
 0x150   :  { %v843_v46 = vadd.f32 %v842_v42, %v841_v44 }
 0x152   :  { %v845_v48 = vadd.f32 %v844_v45, %v843_v46 }
 0x154   :  { %v846_v49 = vrot.slane %v845_v48, 4 }
 0x156   :  { %v847_v52 = vadd.f32 %v846_v49, %v845_v48 }
 0x158   :  { %v848_v53 = vrot.slane %v847_v52, 2 }
 0x15a   :  { %v849_v55 = vadd.f32 %v848_v53, %v847_v52 }
 0x15c   :  { %v850_v57 = vrot.slane %v849_v55, 1 }
 0x15e   :  { %v851_v26 = vadd.f32 %v850_v57, %v849_v55 }
 0x160   :  { %v1438_v59 = vmul.f32 %v1602_v50, %v851_v26 }
 0x162   :  { %v1441_v60 = vrot.slane %v1438_v59, 7 }
 0x164   :  { %v1443_v61 = vsel %vm1442_vm5, %v1441_v60, %v1437_v58 }
 0x165   :  { %v1446_v62 = vsel %vm1445_vm6, %v1443_v61, 0.0 }
 0x166   :  { %1447 = vadd.xlane.f32.xlu0 %v1446_v62 }
 0x18e   :  { %v1379_v63 = vpop.f32.mrf.mxu1 }
 0x190   :  { %v1381_v0 = vpop.f32.mrf.mxu1 }
 0x192   :  { %v1383_v1 = vpop.f32.mrf.mxu1 }
 0x194   :  { %v1384_v2 = vpop.f32.mrf.mxu1 }
 0x1b6   :  { %v1420_v8 = vpop.f32.mrf.mxu1 }
 0x1b7   :  { %v1421_v9 = vadd.f32 %v1420_v8, %v1379_v63 }
 0x1b8   :  { %v1422_v11 = vpop.f32.mrf.mxu1 }
 0x1b9   :  { %v1427_v12 = vmax.f32 %v1421_v9, 0.0  ;;  %v1423_v13 = vadd.f32 %v1422_v11, %v1381_v0 }
 0x1ba   :  { %v1424_v15 = vpop.f32.mrf.mxu1 }
 0x1bb   :  { %v1460_v16 = vmul.f32 %v1453_v10, %v1427_v12  ;;  %v1428_v17 = vmax.f32 %v1423_v13, 0.0 }
 0x1bc   :  { %v1425_v18 = vpop.f32.mrf.mxu1 }
 0x1bd   :  { %v1461_v19 = vmul.f32 %v1457_v14, %v1428_v17  ;;  %v1463_v20 = vsel %vm1462_vm7, %v1460_v16, 0.0 }
 0x1bf   :  { %v1465_v21 = vsel %vm1464_vm8, %v1461_v19, 0.0 }
 0x1c0   :  { %v1466_v22 = vadd.f32 %v1465_v21, %v1463_v20 }
 0x1c2   :  { %1467 = vadd.xlane.f32.xlu0 %v1466_v22 }
 0x1ef   :  { %v1448_v23 = vpop.xlane.xlu0 %1447 }
 0x24b   :  { %v1468_v24 = vpop.xlane.xlu0 %1467 }
 0x24c   :  { %v1469_v25 = vadd.f32 %v1468_v24, %v1448_v23 }
 0x24e   :  { %1471 = vst.msk [vmem:[%s2259_s6] sm:$0x3] %vm1470_vm9, %v1469_v25 }

</bundles_post_ra>
